<compile_context>
chip_gen: v7x
topology: tpu7x:2x2x1
jax: 0.10.0
libtpu: 0.0.40
codegen_flags: <defaults>
</compile_context>

<pallas_src>
import functools

import numpy as np

import jax
import jax.numpy as jnp
from jax.experimental import pallas as pl
from jax.experimental.pallas import tpu as pltpu

LIST_LABELS = ['_unknown_', 'backward', 'bed', 'bird', 'cat', 'dog', 'down',
               'eight', 'five', 'follow', 'forward', 'four', 'go', 'happy',
               'house', 'learn', 'left', 'marvin', 'nine', 'no', 'off', 'on',
               'one', 'right', 'seven', 'sheila', 'six', 'stop', 'three',
               'tree', 'two', 'up', 'visual', 'wow', 'yes', 'zero']

NUM_LABELS = len(LIST_LABELS)   # 36
MAX_LEN = 16                    # >= longest label ('_unknown_' = 9 chars)
PACK = MAX_LEN // 4             # 4 int32 lanes per word (4 chars per int32)
LANE = 128                      # lane-dense output width
MIN_ROWS = 32                   # int8 output needs >= (32, 128) tile rows
MAX_BLOCK_ROWS = 512            # batch-grid block size (well under VMEM caps)

_LABEL_SET = frozenset(LIST_LABELS)


def _encode_packed(word: str) -> np.ndarray:
    """Pack a word into PACK little-endian int32s (4 bytes per int32)."""
    data = word.encode("utf-8")[:MAX_LEN]
    data = data + b"\x00" * (MAX_LEN - len(data))
    return np.frombuffer(data, dtype="<i4").copy()


_PACKED_BY_WORD = {w: _encode_packed(w) for w in LIST_LABELS}
_LABELS_PACKED_T_NP = np.ascontiguousarray(
    np.stack([_PACKED_BY_WORD[w] for w in LIST_LABELS], axis=0).T)  # (4, 36)
LABELS_PACKED_T = jnp.asarray(_LABELS_PACKED_T_NP)                  # int32


def _l2i_kernel(word_ref, labels_ref, out_ref):
    # word_ref:   (blk, PACK) int32        -- one packed word per sublane row
    # labels_ref: (PACK, NUM_LABELS) int32 -- transposed packed label table
    # out_ref:    (blk, LANE) int8         -- per-row index broadcast on lanes
    words = word_ref[...]        # (blk, P)
    labels_t = labels_ref[...]   # (P, N)
    blk = words.shape[0]

    # AND-reduce across the PACK packed-char lanes (tiny static unrolled loop).
    match = words[:, 0:1] == labels_t[0:1, :]                         # (blk, N)
    for p in range(1, PACK):
        match = jnp.logical_and(match, words[:, p:p + 1] == labels_t[p:p + 1, :])

    # Masked (index+1) lane sum: labels are unique, so at most one column
    # matches; an unmatched word yields 0 - 1 = -1 (sentinel).
    col = jax.lax.broadcasted_iota(jnp.int32, (blk, NUM_LABELS), 1)
    idx = jnp.sum(jnp.where(match, col + 1, 0), axis=-1, keepdims=True) - 1

    out_ref[...] = jnp.broadcast_to(idx, (blk, LANE)).astype(jnp.int8)


@functools.lru_cache(maxsize=None)
def _lookup_fn(b_pad: int):
    """Build once per (bucketed) padded batch size: a jitted batched lookup."""
    blk = min(b_pad, MAX_BLOCK_ROWS)      # b_pad is a power of 2 >= 32
    call = pl.pallas_call(
        _l2i_kernel,
        out_shape=jax.ShapeDtypeStruct((b_pad, LANE), jnp.int8),
        grid=(b_pad // blk,),
        in_specs=[
            pl.BlockSpec((blk, PACK), lambda i: (i, 0)),
            pl.BlockSpec((PACK, NUM_LABELS), lambda i: (0, 0)),   # fetched once
        ],
        out_specs=pl.BlockSpec((blk, LANE), lambda i: (i, 0)),
        compiler_params=pltpu.CompilerParams(
            dimension_semantics=("parallel",)),
    )
    # Fused executable: pallas_call + column slice + int32 widen; the label
    # table is captured here so callers never pass it per call.
    return jax.jit(
        lambda codes: call(codes, LABELS_PACKED_T)[:, 0].astype(jnp.int32))


def _padded_batch(bsz: int) -> int:
    """Bucket the compile key: next power of two, floor MIN_ROWS."""
    return max(MIN_ROWS, 1 << (bsz - 1).bit_length())


def labels_to_indices(words) -> jnp.ndarray:
    """Batched L2ISpeechCommands.forward: list[str] -> (B,) int32 indices."""
    bsz = len(words)
    if bsz == 0:
        return jnp.zeros((0,), dtype=jnp.int32)
    # Host-side membership check mirrors list.index's ValueError, with no
    # device->host sync after the kernel.
    missing = [w for w in words if w not in _LABEL_SET]
    if missing:
        raise ValueError(f"{missing[0]!r} is not in list")
    b_pad = _padded_batch(bsz)
    codes = np.zeros((b_pad, PACK), dtype=np.int32)
    for i, w in enumerate(words):
        codes[i] = _PACKED_BY_WORD[w]
    idx = _lookup_fn(b_pad)(jnp.asarray(codes))      # (b_pad,) int32 on device
    return idx[:bsz]


def label_to_index(word: str):
    """Pallas equivalent of L2ISpeechCommands.forward(word).

    Returns a numpy int64 scalar (torch.int64 semantics) at the API boundary
    without flipping the global jax_enable_x64 flag; on-device dtype is int32.
    """
    idx = labels_to_indices([word])
    return np.asarray(idx)[0].astype(np.int64)


if __name__ == "__main__":
    # Deterministic batch of words drawn from the label list.
    key = jax.random.PRNGKey(0)
    picks = np.asarray(jax.random.randint(key, (12,), 0, NUM_LABELS))
    words = [LIST_LABELS[int(i)] for i in picks] + ["marvin", "_unknown_", "zero", "yes"]

    idx = jax.block_until_ready(labels_to_indices(words))   # one pallas_call
    expected = np.array([LIST_LABELS.index(w) for w in words], dtype=np.int32)

    ok = bool(np.array_equal(np.asarray(idx), expected)) and idx.dtype == jnp.int32
    if not ok:
        print(f"MISMATCH batched: got {np.asarray(idx).tolist()} "
              f"expect {expected.tolist()} dtype={idx.dtype}")

    # Single-word API (int64 scalar at the boundary, like torch.int64).
    single = label_to_index("sheila")
    if int(single) != LIST_LABELS.index("sheila") or single.dtype != np.int64:
        ok = False
        print(f"MISMATCH single-word path: got {single!r}")

    # Unknown word must raise, like list.index.
    try:
        label_to_index("not_a_label")
        ok = False
        print("MISMATCH: unknown word did not raise ValueError")
    except ValueError:
        pass

    if ok:
        print("KERNEL_OK")
</pallas_src>

<mosaic_0001>
module attributes {stable_mosaic.version = 11 : i64} {
  func.func @_l2i_kernel(%arg0: i32, %arg1: memref<32x4xi32, #tpu.memory_space<vmem>>, %arg2: memref<4x36xi32, #tpu.memory_space<vmem>>, %arg3: memref<32x128xi8, #tpu.memory_space<vmem>>) attributes {dimension_semantics = [#tpu.dimension_semantics<parallel>], iteration_bounds = array<i64: 1>, scalar_prefetch = 0 : i64, scratch_operands = 0 : i64, tpu.core_type = #tpu.core_type<tc>, window_params = [{transform_indices = @transform_0, window_bounds = array<i64: 32, 4>}, {pipeline_mode = #tpu.pipeline_mode<synchronous>, transform_indices = @transform_1, window_bounds = array<i64: 4, 36>}, {transform_indices = @transform_2, window_bounds = array<i64: 32, 128>}]} {
    %c0 = arith.constant 0 : index
    %c0_0 = arith.constant 0 : index
    %0 = vector.load %arg1[%c0, %c0_0] : memref<32x4xi32, #tpu.memory_space<vmem>>, vector<32x4xi32>
    %c0_1 = arith.constant 0 : index
    %c0_2 = arith.constant 0 : index
    %1 = vector.load %arg2[%c0_1, %c0_2] : memref<4x36xi32, #tpu.memory_space<vmem>>, vector<4x36xi32>
    %2 = vector.extract_strided_slice %0 {offsets = [0, 0], sizes = [32, 1], strides = [1, 1]} : vector<32x4xi32> to vector<32x1xi32>
    %3 = vector.extract_strided_slice %1 {offsets = [0, 0], sizes = [1, 36], strides = [1, 1]} : vector<4x36xi32> to vector<1x36xi32>
    %4 = vector.broadcast %2 : vector<32x1xi32> to vector<32x36xi32>
    %5 = vector.broadcast %3 : vector<1x36xi32> to vector<32x36xi32>
    %6 = arith.cmpi eq, %4, %5 : vector<32x36xi32>
    %7 = vector.extract_strided_slice %0 {offsets = [0, 1], sizes = [32, 1], strides = [1, 1]} : vector<32x4xi32> to vector<32x1xi32>
    %8 = vector.extract_strided_slice %1 {offsets = [1, 0], sizes = [1, 36], strides = [1, 1]} : vector<4x36xi32> to vector<1x36xi32>
    %9 = vector.broadcast %7 : vector<32x1xi32> to vector<32x36xi32>
    %10 = vector.broadcast %8 : vector<1x36xi32> to vector<32x36xi32>
    %11 = arith.cmpi eq, %9, %10 : vector<32x36xi32>
    %12 = arith.andi %6, %11 : vector<32x36xi1>
    %13 = vector.extract_strided_slice %0 {offsets = [0, 2], sizes = [32, 1], strides = [1, 1]} : vector<32x4xi32> to vector<32x1xi32>
    %14 = vector.extract_strided_slice %1 {offsets = [2, 0], sizes = [1, 36], strides = [1, 1]} : vector<4x36xi32> to vector<1x36xi32>
    %15 = vector.broadcast %13 : vector<32x1xi32> to vector<32x36xi32>
    %16 = vector.broadcast %14 : vector<1x36xi32> to vector<32x36xi32>
    %17 = arith.cmpi eq, %15, %16 : vector<32x36xi32>
    %18 = arith.andi %12, %17 : vector<32x36xi1>
    %19 = vector.extract_strided_slice %0 {offsets = [0, 3], sizes = [32, 1], strides = [1, 1]} : vector<32x4xi32> to vector<32x1xi32>
    %20 = vector.extract_strided_slice %1 {offsets = [3, 0], sizes = [1, 36], strides = [1, 1]} : vector<4x36xi32> to vector<1x36xi32>
    %21 = vector.broadcast %19 : vector<32x1xi32> to vector<32x36xi32>
    %22 = vector.broadcast %20 : vector<1x36xi32> to vector<32x36xi32>
    %23 = arith.cmpi eq, %21, %22 : vector<32x36xi32>
    %24 = arith.andi %18, %23 : vector<32x36xi1>
    %25 = tpu.iota {dimensions = array<i32: 1>} : vector<32x36xi32>
    %c1_i32 = arith.constant 1 : i32
    %26 = vector.broadcast %c1_i32 : i32 to vector<32x36xi32>
    %27 = arith.addi %25, %26 : vector<32x36xi32>
    %c0_i32 = arith.constant 0 : i32
    %28 = vector.broadcast %c0_i32 : i32 to vector<32x36xi32>
    %29 = arith.select %24, %27, %28 : vector<32x36xi1>, vector<32x36xi32>
    %cst = arith.constant dense<0> : vector<32xi32>
    %30 = vector.multi_reduction <add>, %29, %cst [1] : vector<32x36xi32> to vector<32xi32>
    %31 = vector.shape_cast %30 : vector<32xi32> to vector<32x1xi32>
    %c1_i32_3 = arith.constant 1 : i32
    %32 = vector.broadcast %c1_i32_3 : i32 to vector<32x1xi32>
    %33 = arith.subi %31, %32 : vector<32x1xi32>
    %34 = vector.shape_cast %33 : vector<32x1xi32> to vector<32x1xi32>
    %35 = vector.broadcast %34 : vector<32x1xi32> to vector<32x128xi32>
    %36 = arith.trunci %35 : vector<32x128xi32> to vector<32x128xi8>
    %c0_4 = arith.constant 0 : index
    %c0_5 = arith.constant 0 : index
    %37 = vector.load %arg3[%c0_4, %c0_5] : memref<32x128xi8, #tpu.memory_space<vmem>>, vector<32x128xi8>
    tpu.vector_store %arg3[%c0_4, %c0_5], %36 {strides = array<i32>} : memref<32x128xi8, #tpu.memory_space<vmem>>, vector<32x128xi8>,
    return
  }
  func.func @transform_0(%arg0: i32) -> (i32, i32) {
    %c0_i32 = arith.constant 0 : i32
    %c0_i32_0 = arith.constant 0 : i32
    return %arg0, %c0_i32 : i32, i32
  }
  func.func @transform_1(%arg0: i32) -> (i32, i32) {
    %c0_i32 = arith.constant 0 : i32
    %c0_i32_0 = arith.constant 0 : i32
    %c0_i32_1 = arith.constant 0 : i32
    return %c0_i32, %c0_i32_0 : i32, i32
  }
  func.func @transform_2(%arg0: i32) -> (i32, i32) {
    %c0_i32 = arith.constant 0 : i32
    %c0_i32_0 = arith.constant 0 : i32
    return %arg0, %c0_i32 : i32, i32
  }
}

</mosaic_0001>

<bundles_post_ra>
// kernel: _lambda_.1
= control target key start
LH: loop header
LB: loop body
LE: loop exit
PB: predicated region body
PF: predicated region fallthrough
CT: control target
= control target key end

     0   :  { %v231_v0 = vmov 0   ;;  %v232_v5 = vmov 1   ;;  %v233_v6 = vmov 2   ;;  %v234_v7 = vmov 3   ;;  %s298_s0 = inlined_call_operand.vmem [shape: s32[32,4], index: 0, kind: input, shape index: {}]   ;;  %s299_s1 = inlined_call_operand.vmem [shape: s32[4,36], index: 1, kind: input, shape index: {}]   ;;  %s300_s2 = inlined_call_operand.vmem [shape: s8[32,128], index: 2, kind: output, shape index: {}]  }
   0x1   :  { %224 = vset.pattern.permute.xlu1 %v231_v0  ;;  %223 = vset.pattern.permute.xlu0 %v231_v0  ;;  %v13_v1 = vld [vmem:[%s298_s0 + $0x10] sm:$0xff]  ;;  %v11_v2 = vld [vmem:[%s298_s0] sm:$0xff]  ;;  %v14_v3 = vld [vmem:[%s298_s0 + $0x18] sm:$0xff]  ;;  %v28_v12 = vlaneseq  ;;  %vm115_vm7 = vcmask 293888  }
   0x2   :  { %23 = vperm.xlu1 %224, %v13_v1   ;;  %17 = vperm.xlu0 %223, %v11_v2   ;;  %v12_v4 = vld [vmem:[%s298_s0 + $0x8] sm:$0xff]  ;;  %v15_v21 = vld [vmem:[%s299_s1] sm:$0xf] }
   0x3   :  { %v268_v15 = vshrl.u32 %v28_v12, 7  ;;  %v109_v28 = vand.u32 127, %v28_v12  ;;  %v235_v12 = vmov 269488144  }
   0x5   :  { %v50_v16 = vsub.s32 1, %v268_v15  ;;  %v74_v19 = vsub.s32 2, %v268_v15  ;;  %v30_v20 = vsub.s32 0, %v268_v15  ;;  %v98_v23 = vsub.s32 3, %v268_v15 }
   0x6   :  { %26 = vperm.xlu1 %224, %v14_v3   ;;  %20 = vperm.xlu0 %223, %v12_v4   ;;  %v110_v31 = vadd.s32 1, %v109_v28 }
   0x7   :  { %v51_v22 = vrot.slane %v15_v21, %v50_v16  ;;  %v75_v24 = vrot.slane %v15_v21, %v74_v19  ;;  %v31_v25 = vrot.slane %v15_v21, %v30_v20  ;;  %v99_v29 = vrot.slane %v15_v21, %v98_v23 }
   0xa   :  { %226 = vset.pattern.permute.xlu1 %v232_v5  ;;  %225 = vset.pattern.permute.xlu0 %v232_v5 }
   0xb   :  { %40 = vperm.xlu1 %226, %v12_v4   ;;  %37 = vperm.xlu0 %225, %v11_v2  }
   0xf   :  { %43 = vperm.xlu1 %226, %v13_v1   ;;  %46 = vperm.xlu0 %225, %v14_v3  }
  0x13   :  { %227 = vset.pattern.permute.xlu1 %v233_v6  ;;  %228 = vset.pattern.permute.xlu0 %v233_v6 }
  0x14   :  { %61 = vperm.xlu1 %227, %v11_v2   ;;  %64 = vperm.xlu0 %228, %v12_v4  }
  0x18   :  { %67 = vperm.xlu1 %227, %v13_v1   ;;  %229 = vset.pattern.permute.xlu0 %v234_v7 }
  0x19   :  { %85 = vperm.xlu0 %229, %v11_v2  }
  0x1c   :  { %70 = vperm.xlu1 %227, %v14_v3  }
  0x1d   :  { %94 = vperm.xlu0 %229, %v14_v3  }
  0x20   :  { %230 = vset.pattern.permute.xlu1 %v234_v7 }
  0x21   :  { %88 = vperm.xlu1 %230, %v12_v4  }
  0x25   :  { %91 = vperm.xlu1 %230, %v13_v1  }
  0x81   :  { %v266_v8 = vpop.permute.xlu1 %23  ;;  %v18_v9 = vpop.permute.xlu0 %17 }
  0x82   :  { %vm32_vm0 = vcmp.eq.s32.totalorder %v18_v9, %v31_v25 }
  0x85   :  { %v27_v10 = vpop.permute.xlu1 %26  ;;  %v21_v11 = vpop.permute.xlu0 %20 }
  0x86   :  { %vm35_vm9 = vcmp.eq.s32.totalorder %v27_v10, %v31_v25  ;;  %vm33_vm12 = vcmp.eq.s32.totalorder %v21_v11, %v31_v25 }
  0x8a   :  { %v41_v13 = vpop.permute.xlu1 %40  ;;  %v38_v14 = vpop.permute.xlu0 %37 }
  0x8b   :  { %vm52_vm1 = vcmp.eq.s32.totalorder %v38_v14, %v51_v22  ;;  %vm53_vm13 = vcmp.eq.s32.totalorder %v41_v13, %v51_v22  ;;  %v176_v13 = vunpack.c.l.s4 %v235_v12  ;;  %v236_v14 = vmov 842150450  }
  0x8c   :  { %vm56_vm3 = vmand %vm32_vm0, %vm52_vm1  ;;  %v183_v16 = vunpack.c.l.s4 %v236_v14 }
  0x8e   :  { %v44_v17 = vpop.permute.xlu1 %43  ;;  %v47_v18 = vpop.permute.xlu0 %46 }
  0x8f   :  { %vm55_vm4 = vcmp.eq.s32.totalorder %v47_v18, %v51_v22 }
  0x90   :  { %vm59_vm10 = vmand %vm35_vm9, %vm55_vm4  ;;  %vm34_vm9 = vcmp.eq.s32.totalorder %v266_v8, %v31_v25 }
  0x93   :  { %v62_v26 = vpop.permute.xlu1 %61  ;;  %v65_v27 = vpop.permute.xlu0 %64 }
  0x94   :  { %vm76_vm2 = vcmp.eq.s32.totalorder %v62_v26, %v75_v24  ;;  %vm77_vm0 = vcmp.eq.s32.totalorder %v65_v27, %v75_v24 }
  0x95   :  { %vm80_vm5 = vmand %vm56_vm3, %vm76_vm2  ;;  %vm54_vm3 = vcmp.eq.s32.totalorder %v44_v17, %v51_v22  ;;  %v237_v17 = vmov 1414812756   ;;  %v238_v22 = vmov 1987475062  }
  0x96   :  { %vm57_vm2 = vmand %vm33_vm12, %vm53_vm13  ;;  %v190_v18 = vunpack.c.l.s4 %v237_v17  ;;  %v197_v23 = vunpack.c.l.s4 %v238_v22 }
  0x97   :  { %v68_v30 = vpop.permute.xlu1 %67 }
  0x98   :  { %v86_v32 = vpop.permute.xlu0 %85 }
  0x99   :  { %vm100_vm6 = vcmp.eq.s32.totalorder %v86_v32, %v99_v29  ;;  %v191_v32 = vunpack.c.0.s8 %v190_v18 }
  0x9a   :  { %vm104_vm8 = vmand %vm80_vm5, %vm100_vm6  ;;  %vm78_vm6 = vcmp.eq.s32.totalorder %v68_v30, %v75_v24  ;;  %v184_v30 = vunpack.c.0.s8 %v183_v16 }
  0x9b   :  { %v111_v33 = vsel %vm104_vm8, %v110_v31, 0  ;;  %v71_v34 = vpop.permute.xlu1 %70  ;;  %vm81_vm5 = vmand %vm57_vm2, %vm77_vm0 }
  0x9c   :  { %vm79_vm11 = vcmp.eq.s32.totalorder %v71_v34, %v75_v24  ;;  %v95_v35 = vpop.permute.xlu0 %94  ;;  %v116_v36 = vsel %vm115_vm7, %v111_v33, 0  ;;  %v198_v33 = vunpack.c.0.s8 %v197_v23 }
  0x9d   :  { %vm83_vm14 = vmand %vm59_vm10, %vm79_vm11  ;;  %vm103_vm15 = vcmp.eq.s32.totalorder %v95_v35, %v99_v29  ;;  %v118_v37 = vshrl.u32 %v116_v36, 16  ;;  %v117_v57 = vand.u32 65535, %v116_v36 }
  0x9e   :  { %vm107_vm1 = vmand %vm83_vm14, %vm103_vm15 }
  0x9f   :  { %v114_v38 = vsel %vm107_vm1, %v110_v31, 0  ;;  %v120_v39 = vcvt.s32.f32 %v118_v37  ;;  %vm58_vm10 = vmand %vm34_vm9, %vm54_vm3  ;;  %v119_v58 = vcvt.s32.f32 %v117_v57 }
  0xa0   :  { %v89_v40 = vpop.permute.xlu1 %88  ;;  %v155_v41 = vsel %vm115_vm7, %v114_v38, 0  ;;  %vm82_vm11 = vmand %vm58_vm10, %vm78_vm6 }
  0xa1   :  { %vm101_vm4 = vcmp.eq.s32.totalorder %v89_v40, %v99_v29  ;;  %123 = vadd.xlane.f32.xlu1 %v120_v39  ;;  %v157_v42 = vshrl.u32 %v155_v41, 16  ;;  %v156_v52 = vand.u32 65535, %v155_v41  ;;  %v187_v39 = vsub.s32 %v184_v30, %v268_v15 }
  0xa2   :  { %vm105_vm8 = vmand %vm81_vm5, %vm101_vm4  ;;  %v194_v41 = vsub.s32 %v191_v32, %v268_v15 }
  0xa3   :  { %v112_v43 = vsel %vm105_vm8, %v110_v31, 0  ;;  %v159_v44 = vcvt.s32.f32 %v157_v42  ;;  %v158_v56 = vcvt.s32.f32 %v156_v52  ;;  %v201_v42 = vsub.s32 %v198_v33, %v268_v15 }
  0xa4   :  { %v92_v45 = vpop.permute.xlu1 %91  ;;  %v129_v46 = vsel %vm115_vm7, %v112_v43, 0 }
  0xa5   :  { %vm102_vm12 = vcmp.eq.s32.totalorder %v92_v45, %v99_v29  ;;  %162 = vadd.xlane.f32.xlu1 %v159_v44  ;;  %v131_v47 = vshrl.u32 %v129_v46, 16  ;;  %v130_v48 = vand.u32 65535, %v129_v46  ;;  %v177_v29 = vunpack.c.0.s8 %v176_v13 }
  0xa6   :  { %vm106_vm13 = vmand %vm82_vm11, %vm102_vm12 }
  0xa7   :  { %v113_v49 = vsel %vm106_vm13, %v110_v31, 0  ;;  %v133_v50 = vcvt.s32.f32 %v131_v47  ;;  %v132_v51 = vcvt.s32.f32 %v130_v48  ;;  %v180_v38 = vsub.s32 %v177_v29, %v268_v15 }
  0xa8   :  { %v142_v53 = vsel %vm115_vm7, %v113_v49, 0 }
  0xa9   :  { %136 = vadd.xlane.f32.xlu0 %v133_v50  ;;  %134 = vadd.xlane.f32.xlu1 %v132_v51  ;;  %v144_v54 = vshrl.u32 %v142_v53, 16  ;;  %v143_v59 = vand.u32 65535, %v142_v53 }
  0xab   :  { %v146_v55 = vcvt.s32.f32 %v144_v54  ;;  %v145_v60 = vcvt.s32.f32 %v143_v59 }
  0xad   :  { %149 = vadd.xlane.f32.xlu0 %v146_v55  ;;  %160 = vadd.xlane.f32.xlu1 %v158_v56 }
  0xb1   :  { %121 = vadd.xlane.f32.xlu0 %v119_v58 }
  0xb5   :  { %147 = vadd.xlane.f32.xlu0 %v145_v60 }
 0x12e   :  { %v124_v61 = vpop.xlane.xlu1 %123 }
 0x12f   :  { %v126_v1 = vcvt.f32.s32 %v124_v61 }
 0x131   :  { %v127_v6 = vshll.u32 %v126_v1, 16 }
 0x132   :  { %v163_v62 = vpop.xlane.xlu1 %162 }
 0x133   :  { %v165_v5 = vcvt.f32.s32 %v163_v62 }
 0x135   :  { %v166_v19 = vshll.u32 %v165_v5, 16 }
 0x136   :  { %v135_v63 = vpop.xlane.xlu1 %134  ;;  %v137_v0 = vpop.xlane.xlu0 %136 }
 0x137   :  { %v139_v3 = vcvt.f32.s32 %v137_v0  ;;  %v138_v20 = vcvt.f32.s32 %v135_v63 }
 0x139   :  { %v140_v8 = vshll.u32 %v139_v3, 16 }
 0x13a   :  { %v150_v2 = vpop.xlane.xlu0 %149  ;;  %v161_v4 = vpop.xlane.xlu1 %160 }
 0x13b   :  { %v164_v9 = vcvt.f32.s32 %v161_v4  ;;  %v152_v10 = vcvt.f32.s32 %v150_v2  ;;  %v141_v25 = vadd.s32 %v140_v8, %v138_v20 }
 0x13d   :  { %v167_v26 = vadd.s32 %v166_v19, %v164_v9  ;;  %v153_v27 = vshll.u32 %v152_v10, 16  ;;  %v212_v35 = vadd.s32 4294967295, %v141_v25 }
 0x13e   :  { %v122_v7 = vpop.xlane.xlu0 %121 }
 0x13f   :  { %v125_v11 = vcvt.f32.s32 %v122_v7  ;;  %v214_v36 = vadd.s32 4294967295, %v167_v26 }
 0x141   :  { %v128_v21 = vadd.s32 %v127_v6, %v125_v11 }
 0x142   :  { %v148_v24 = vpop.xlane.xlu0 %147 }
 0x143   :  { %v151_v28 = vcvt.f32.s32 %v148_v24  ;;  %v211_v31 = vadd.s32 4294967295, %v128_v21 }
 0x145   :  { %v154_v34 = vadd.s32 %v153_v27, %v151_v28  ;;  %v172_v40 = vpack.c.b16 %v212_v35, %v211_v31 }
 0x147   :  { %v213_v37 = vadd.s32 4294967295, %v154_v34 }
 0x149   :  { %v173_v43 = vpack.c.b16 %v214_v36, %v213_v37 }
 0x14b   :  { %v174_v44 = vpack.c.b8 %v173_v43, %v172_v40 }
 0x14d   :  { %v181_v45 = vrot.slane %v174_v44, %v180_v38  ;;  %v188_v46 = vrot.slane %v174_v44, %v187_v39  ;;  %v195_v47 = vrot.slane %v174_v44, %v194_v41  ;;  %v202_v48 = vrot.slane %v174_v44, %v201_v42 }
 0x14f   :  { %203 = vst [vmem:[%s300_s2] sm:$0x3] %v181_v45  ;;  %204 = vst [vmem:[%s300_s2 + $0x2] sm:$0x3] %v188_v46 }
 0x150   :  { %205 = vst [vmem:[%s300_s2 + $0x4] sm:$0x3] %v195_v47  ;;  %206 = vst [vmem:[%s300_s2 + $0x6] sm:$0x3] %v202_v48 }

</bundles_post_ra>
